<compile_context>
chip_gen: v6e
topology: v6e:2x2x1
jax: 0.10.0
libtpu: 0.0.40
codegen_flags: <defaults>
</compile_context>

<pallas_src>
import functools
import math

import jax
import jax.numpy as jnp
from jax.experimental import pallas as pl
from jax.experimental.pallas import tpu as pltpu


# ------------------------------ Pallas kernels ------------------------------

def _mha_block_kernel(*refs, nhead, eps, has_qpos, has_kpos):
    """Fused: pos-add + QKV proj + MHA + out proj + residual + LayerNorm.

    Ref order: xq, [qpos], kv, [kpos], wq, bq, wk, bk, wv, bv, wo, bo, g, b, out.
    Block views: xq/qpos/out = (1, tq, E); kv/kpos = (1, Lk, E).
    """
    i = 0
    xq_ref = refs[i]; i += 1
    qpos_ref = None
    if has_qpos:
        qpos_ref = refs[i]; i += 1
    kv_ref = refs[i]; i += 1
    kpos_ref = None
    if has_kpos:
        kpos_ref = refs[i]; i += 1
    (wq_ref, bq_ref, wk_ref, bk_ref, wv_ref, bv_ref,
     wo_ref, bo_ref, g_ref, b_ref, o_ref) = refs[i:i + 11]

    xq = xq_ref[0].astype(jnp.float32)                     # (tq, E) residual/query src
    if has_qpos:
        q_in = xq + qpos_ref[0].astype(jnp.float32)
    else:
        q_in = xq
    kv = kv_ref[0].astype(jnp.float32)                     # (Lk, E) key/value src
    if has_kpos:
        k_in = kv + kpos_ref[0].astype(jnp.float32)
    else:
        k_in = kv
    v_in = kv

    # Input projections: bf16 operands, f32 accumulation.  wq/bq carry 1/sqrt(Dh).
    q = jnp.dot(q_in.astype(jnp.bfloat16), wq_ref[...],
                preferred_element_type=jnp.float32) + bq_ref[...]
    k = jnp.dot(k_in.astype(jnp.bfloat16), wk_ref[...],
                preferred_element_type=jnp.float32) + bk_ref[...]
    v = jnp.dot(v_in.astype(jnp.bfloat16), wv_ref[...],
                preferred_element_type=jnp.float32) + bv_ref[...]

    E = q.shape[-1]
    Dh = E // nhead

    # Per-head attention (heads are contiguous lane slices of the projections).
    heads = []
    for h in range(nhead):
        sl = slice(h * Dh, (h + 1) * Dh)
        qh = q[:, sl].astype(jnp.bfloat16)
        kh = k[:, sl].astype(jnp.bfloat16)
        vh = v[:, sl].astype(jnp.bfloat16)
        s = jax.lax.dot_general(qh, kh, (((1,), (1,)), ((), ())),
                                preferred_element_type=jnp.float32)    # (tq, Lk)
        m = jnp.max(s, axis=-1, keepdims=True)
        p = jnp.exp(s - m)
        l = jnp.sum(p, axis=-1, keepdims=True)
        oh = jnp.dot(p.astype(jnp.bfloat16), vh,
                     preferred_element_type=jnp.float32)               # (tq, Dh)
        heads.append(oh * pl.reciprocal(l, approx=True))

    # Single full-K output projection on the concatenated heads.
    attn = jnp.concatenate(heads, axis=-1)                             # (tq, E)
    o = jnp.dot(attn.astype(jnp.bfloat16), wo_ref[...],
                preferred_element_type=jnp.float32) + bo_ref[...]

    # Residual + LayerNorm (f32 math).
    z = xq + o
    mu = jnp.mean(z, axis=-1, keepdims=True)
    var = jnp.mean((z - mu) ** 2, axis=-1, keepdims=True)
    zn = (z - mu) * jax.lax.rsqrt(var + eps)
    o_ref[0] = (zn * g_ref[...] + b_ref[...]).astype(o_ref.dtype)


def _ffn_block_kernel(x_ref, w1_ref, b1_ref, w2_ref, b2_ref, g_ref, b_ref,
                      o_ref, *, eps, f_chunk):
    """Fused linear1 + ReLU + linear2 + residual + LayerNorm on a row tile.

    The hidden dim F is processed in chunks so the (tm, F) intermediate never
    fully materializes.
    """
    x = x_ref[...].astype(jnp.float32)                     # (tm, E)
    xb = x.astype(jnp.bfloat16)
    F = w1_ref.shape[1]

    y = jnp.zeros(x.shape, jnp.float32)
    for c0 in range(0, F, f_chunk):
        c1 = c0 + f_chunk
        h = jnp.dot(xb, w1_ref[:, c0:c1],
                    preferred_element_type=jnp.float32) + b1_ref[:, c0:c1]
        h = jnp.maximum(h, 0.0)
        y = y + jnp.dot(h.astype(jnp.bfloat16), w2_ref[c0:c1, :],
                        preferred_element_type=jnp.float32)
    y = y + b2_ref[...]

    z = x + y
    mu = jnp.mean(z, axis=-1, keepdims=True)
    var = jnp.mean((z - mu) ** 2, axis=-1, keepdims=True)
    zn = (z - mu) * jax.lax.rsqrt(var + eps)
    o_ref[...] = (zn * g_ref[...] + b_ref[...]).astype(o_ref.dtype)


# ------------------------------ wrappers ------------------------------------

_VMEM_LIMIT = 32 * 1024 * 1024   # safe on v5e/v6e/v7x


def _pick_seq_tile(L, max_tile=256):
    """Largest multiple-of-8 divisor of L that is <= max_tile (else full L)."""
    for t in range(max_tile, 7, -8):
        if L % t == 0:
            return t
    return L


def _pick_f_chunk(F):
    for t in (512, 256, 128):
        if F % t == 0:
            return t
    return F


def mha_block(x_q, q_pos, kv, k_pos, p, norm_g, norm_b, nhead, eps=1e-5):
    """Fused attention block, batch-major activations (N, L, E).

    q = x_q + q_pos, k = kv + k_pos, v = kv, residual = x_q.
    """
    N, Lq, E = x_q.shape
    Lk = kv.shape[1]
    Dh = E // nhead
    scale = 1.0 / math.sqrt(Dh)

    # Fold the softmax scale into the q projection; weights go in as bf16.
    wq = (p["wq"] * scale).astype(jnp.bfloat16)
    bq = p["bq"] * scale
    wk = p["wk"].astype(jnp.bfloat16)
    wv = p["wv"].astype(jnp.bfloat16)
    wo = p["wo"].astype(jnp.bfloat16)

    tq = _pick_seq_tile(Lq)
    n_q = Lq // tq
    has_qpos = q_pos is not None
    has_kpos = k_pos is not None

    kern = functools.partial(_mha_block_kernel, nhead=nhead, eps=eps,
                             has_qpos=has_qpos, has_kpos=has_kpos)

    q_spec = pl.BlockSpec((1, tq, E), lambda n, lq: (n, lq, 0))
    kv_spec = pl.BlockSpec((1, Lk, E), lambda n, lq: (n, 0, 0))
    w_spec = pl.BlockSpec((E, E), lambda n, lq: (0, 0))
    b_spec = pl.BlockSpec((1, E), lambda n, lq: (0, 0))

    operands = [x_q]
    in_specs = [q_spec]
    if has_qpos:
        operands.append(q_pos); in_specs.append(q_spec)
    operands.append(kv); in_specs.append(kv_spec)
    if has_kpos:
        operands.append(k_pos); in_specs.append(kv_spec)
    operands += [wq, bq, wk, p["bk"], wv, p["bv"], wo, p["bo"], norm_g, norm_b]
    in_specs += [w_spec, b_spec, w_spec, b_spec, w_spec, b_spec, w_spec, b_spec,
                 b_spec, b_spec]

    return pl.pallas_call(
        kern,
        grid=(N, n_q),
        in_specs=in_specs,
        out_specs=pl.BlockSpec((1, tq, E), lambda n, lq: (n, lq, 0)),
        out_shape=jax.ShapeDtypeStruct((N, Lq, E), x_q.dtype),
        compiler_params=pltpu.CompilerParams(
            dimension_semantics=("parallel", "parallel"),
            vmem_limit_bytes=_VMEM_LIMIT),
    )(*operands)


def ffn_block(x, w1, b1, w2, b2, norm_g, norm_b, eps=1e-5):
    """x: (M, E) rows; returns LayerNorm(x + linear2(relu(linear1(x))))."""
    M, E = x.shape
    F = w1.shape[1]

    # Pad the row count so a fixed tile always divides it (no whole-array fallback).
    Mp = ((M + 7) // 8) * 8
    if Mp >= 256:
        tm = 256
        Mp = ((M + tm - 1) // tm) * tm
    else:
        tm = Mp
    xp = x if Mp == M else jnp.pad(x, ((0, Mp - M), (0, 0)))

    f_chunk = _pick_f_chunk(F)
    kern = functools.partial(_ffn_block_kernel, eps=eps, f_chunk=f_chunk)

    out = pl.pallas_call(
        kern,
        grid=(Mp // tm,),
        in_specs=[pl.BlockSpec((tm, E), lambda i: (i, 0)),
                  pl.BlockSpec((E, F), lambda i: (0, 0)),
                  pl.BlockSpec((1, F), lambda i: (0, 0)),
                  pl.BlockSpec((F, E), lambda i: (0, 0)),
                  pl.BlockSpec((1, E), lambda i: (0, 0)),
                  pl.BlockSpec((1, E), lambda i: (0, 0)),
                  pl.BlockSpec((1, E), lambda i: (0, 0))],
        out_specs=pl.BlockSpec((tm, E), lambda i: (i, 0)),
        out_shape=jax.ShapeDtypeStruct((Mp, E), x.dtype),
        compiler_params=pltpu.CompilerParams(
            dimension_semantics=("parallel",),
            vmem_limit_bytes=_VMEM_LIMIT),
    )(xp, w1.astype(jnp.bfloat16), b1, w2.astype(jnp.bfloat16), b2,
      norm_g, norm_b)
    return out[:M]


def with_pos_embed(x, pos):
    return x if pos is None else x + pos


def transformer_decoder_layer(tgt, memory, params, nhead,
                              pos=None, query_pos=None):
    """forward_post semantics (normalize_before=False), dropout = identity.

    tgt: (T, N, E), memory: (S, N, E) (PyTorch MultiheadAttention layout).
    """
    T, N, E = tgt.shape

    # Single layout change to batch-major (N, L, E); pos adds happen in-kernel.
    tgt_b = jnp.transpose(tgt, (1, 0, 2))
    mem_b = jnp.transpose(memory, (1, 0, 2))
    qpos_b = None if query_pos is None else jnp.transpose(query_pos, (1, 0, 2))
    pos_b = None if pos is None else jnp.transpose(pos, (1, 0, 2))

    # --- self attention block: q = k = tgt+qpos, v = tgt, residual = tgt ---
    x = mha_block(tgt_b, qpos_b, tgt_b, qpos_b, params["self_attn"],
                  params["norm1_g"], params["norm1_b"], nhead)

    # --- cross attention block: q = x+qpos, k = mem+pos, v = mem, residual = x ---
    x = mha_block(x, qpos_b, mem_b, pos_b, params["cross_attn"],
                  params["norm2_g"], params["norm2_b"], nhead)

    # --- feed-forward block ---
    y = ffn_block(x.reshape(N * T, E), params["w1"], params["b1"],
                  params["w2"], params["b2"],
                  params["norm3_g"], params["norm3_b"]).reshape(N, T, E)

    return jnp.transpose(y, (1, 0, 2))


# ------------------------------ pure-JAX reference ---------------------------

def _ref_mha(query, key, value, p, nhead):
    Lq, N, E = query.shape
    Lk = key.shape[0]
    Dh = E // nhead
    scale = 1.0 / math.sqrt(Dh)
    q = query.reshape(Lq * N, E) @ p["wq"] + p["bq"]
    k = key.reshape(Lk * N, E) @ p["wk"] + p["bk"]
    v = value.reshape(Lk * N, E) @ p["wv"] + p["bv"]

    def split(x, L):
        return x.reshape(L, N, nhead, Dh).transpose(1, 2, 0, 3).reshape(N * nhead, L, Dh)

    qh, kh, vh = split(q, Lq), split(k, Lk), split(v, Lk)
    s = jnp.einsum("bqd,bkd->bqk", qh * scale, kh)
    p_ = jax.nn.softmax(s, axis=-1)
    o = jnp.einsum("bqk,bkd->bqd", p_, vh)
    o = o.reshape(N, nhead, Lq, Dh).transpose(2, 0, 1, 3).reshape(Lq * N, E)
    o = o @ p["wo"] + p["bo"]
    return o.reshape(Lq, N, E)


def _ref_ln(x, g, b, eps=1e-5):
    mu = jnp.mean(x, axis=-1, keepdims=True)
    var = jnp.mean((x - mu) ** 2, axis=-1, keepdims=True)
    return (x - mu) * jax.lax.rsqrt(var + eps) * g + b


def _ref_layer(tgt, memory, params, nhead, pos=None, query_pos=None):
    q = k = with_pos_embed(tgt, query_pos)
    t2 = _ref_mha(q, k, tgt, params["self_attn"], nhead)
    x = _ref_ln(tgt + t2, params["norm1_g"], params["norm1_b"])
    t2 = _ref_mha(with_pos_embed(x, query_pos), with_pos_embed(memory, pos),
                  memory, params["cross_attn"], nhead)
    x = _ref_ln(x + t2, params["norm2_g"], params["norm2_b"])
    h = jnp.maximum(x @ params["w1"] + params["b1"], 0.0)
    t2 = h @ params["w2"] + params["b2"]
    x = _ref_ln(x + t2, params["norm3_g"], params["norm3_b"])
    return x


# ------------------------------ param init ----------------------------------

def init_params(key, d_model, nhead, dim_feedforward):
    def w(k, shape):
        return (0.02 * jax.random.normal(k, shape)).astype(jnp.float32)

    ks = iter(jax.random.split(key, 16))

    def mha_params():
        return dict(
            wq=w(next(ks), (d_model, d_model)), bq=w(next(ks), (1, d_model)),
            wk=w(next(ks), (d_model, d_model)), bk=w(next(ks), (1, d_model)),
            wv=w(next(ks), (d_model, d_model)), bv=w(next(ks), (1, d_model)),
            wo=w(next(ks), (d_model, d_model)), bo=w(next(ks), (1, d_model)),
        )

    params = dict(
        self_attn=mha_params(),
        cross_attn=mha_params(),
        norm1_g=jnp.ones((1, d_model), jnp.float32),
        norm1_b=jnp.zeros((1, d_model), jnp.float32),
        norm2_g=jnp.ones((1, d_model), jnp.float32),
        norm2_b=jnp.zeros((1, d_model), jnp.float32),
        norm3_g=jnp.ones((1, d_model), jnp.float32),
        norm3_b=jnp.zeros((1, d_model), jnp.float32),
    )
    kf = jax.random.split(key, 4)
    params["w1"] = (0.02 * jax.random.normal(kf[0], (d_model, dim_feedforward))).astype(jnp.float32)
    params["b1"] = jnp.zeros((1, dim_feedforward), jnp.float32)
    params["w2"] = (0.02 * jax.random.normal(kf[1], (dim_feedforward, d_model))).astype(jnp.float32)
    params["b2"] = jnp.zeros((1, d_model), jnp.float32)
    return params


# ------------------------------ main -----------------------------------------

if __name__ == "__main__":
    d_model, nhead, dim_feedforward = 32, 4, 64
    T, S, N = 8, 16, 2  # num queries, memory length, batch

    key = jax.random.PRNGKey(0)
    k_tgt, k_mem, k_pos, k_qpos, k_par = jax.random.split(key, 5)

    tgt = jax.random.normal(k_tgt, (T, N, d_model), jnp.float32)
    memory = jax.random.normal(k_mem, (S, N, d_model), jnp.float32)
    pos = jax.random.normal(k_pos, (S, N, d_model), jnp.float32)
    query_pos = jax.random.normal(k_qpos, (T, N, d_model), jnp.float32)

    params = init_params(k_par, d_model, nhead, dim_feedforward)

    out = transformer_decoder_layer(tgt, memory, params, nhead,
                                    pos=pos, query_pos=query_pos)
    out = jax.block_until_ready(out)

    ref = _ref_layer(tgt, memory, params, nhead, pos=pos, query_pos=query_pos)
    ref = jax.block_until_ready(ref)

    assert out.shape == (T, N, d_model)
    # bf16 MXU operands + approx reciprocal -> slightly looser tolerance vs f32 ref.
    assert jnp.allclose(out, ref, rtol=2e-2, atol=2e-2), float(jnp.max(jnp.abs(out - ref)))

    print("KERNEL_OK")
</pallas_src>

<mosaic_0001>
module attributes {stable_mosaic.version = 11 : i64} {
  func.func @_mha_block_kernel(%arg0: i32, %arg1: i32, %arg2: memref<1x8x32xf32, #tpu.memory_space<vmem>>, %arg3: memref<1x8x32xf32, #tpu.memory_space<vmem>>, %arg4: memref<1x8x32xf32, #tpu.memory_space<vmem>>, %arg5: memref<1x8x32xf32, #tpu.memory_space<vmem>>, %arg6: memref<32x32xbf16, #tpu.memory_space<vmem>>, %arg7: memref<1x32xf32, #tpu.memory_space<vmem>>, %arg8: memref<32x32xbf16, #tpu.memory_space<vmem>>, %arg9: memref<1x32xf32, #tpu.memory_space<vmem>>, %arg10: memref<32x32xbf16, #tpu.memory_space<vmem>>, %arg11: memref<1x32xf32, #tpu.memory_space<vmem>>, %arg12: memref<32x32xbf16, #tpu.memory_space<vmem>>, %arg13: memref<1x32xf32, #tpu.memory_space<vmem>>, %arg14: memref<1x32xf32, #tpu.memory_space<vmem>>, %arg15: memref<1x32xf32, #tpu.memory_space<vmem>>, %arg16: memref<1x8x32xf32, #tpu.memory_space<vmem>>) attributes {dimension_semantics = [#tpu.dimension_semantics<parallel>, #tpu.dimension_semantics<parallel>], iteration_bounds = array<i64: 2, 1>, scalar_prefetch = 0 : i64, scratch_operands = 0 : i64, tpu.core_type = #tpu.core_type<tc>, window_params = [{transform_indices = @transform_0, window_bounds = array<i64: 1, 8, 32>}, {transform_indices = @transform_1, window_bounds = array<i64: 1, 8, 32>}, {transform_indices = @transform_2, window_bounds = array<i64: 1, 8, 32>}, {transform_indices = @transform_3, window_bounds = array<i64: 1, 8, 32>}, {pipeline_mode = #tpu.pipeline_mode<synchronous>, transform_indices = @transform_4, window_bounds = array<i64: 32, 32>}, {pipeline_mode = #tpu.pipeline_mode<synchronous>, transform_indices = @transform_5, window_bounds = array<i64: 1, 32>}, {pipeline_mode = #tpu.pipeline_mode<synchronous>, transform_indices = @transform_6, window_bounds = array<i64: 32, 32>}, {pipeline_mode = #tpu.pipeline_mode<synchronous>, transform_indices = @transform_7, window_bounds = array<i64: 1, 32>}, {pipeline_mode = #tpu.pipeline_mode<synchronous>, transform_indices = @transform_8, window_bounds = array<i64: 32, 32>}, {pipeline_mode = #tpu.pipeline_mode<synchronous>, transform_indices = @transform_9, window_bounds = array<i64: 1, 32>}, {pipeline_mode = #tpu.pipeline_mode<synchronous>, transform_indices = @transform_10, window_bounds = array<i64: 32, 32>}, {pipeline_mode = #tpu.pipeline_mode<synchronous>, transform_indices = @transform_11, window_bounds = array<i64: 1, 32>}, {pipeline_mode = #tpu.pipeline_mode<synchronous>, transform_indices = @transform_12, window_bounds = array<i64: 1, 32>}, {pipeline_mode = #tpu.pipeline_mode<synchronous>, transform_indices = @transform_13, window_bounds = array<i64: 1, 32>}, {transform_indices = @transform_14, window_bounds = array<i64: 1, 8, 32>}]} {
    %c0 = arith.constant 0 : index
    %c0_0 = arith.constant 0 : index
    %c0_1 = arith.constant 0 : index
    %0 = vector.load %arg2[%c0, %c0_0, %c0_1] : memref<1x8x32xf32, #tpu.memory_space<vmem>>, vector<1x8x32xf32>
    %1 = vector.shape_cast %0 : vector<1x8x32xf32> to vector<8x32xf32>
    %c0_2 = arith.constant 0 : index
    %c0_3 = arith.constant 0 : index
    %c0_4 = arith.constant 0 : index
    %2 = vector.load %arg3[%c0_2, %c0_3, %c0_4] : memref<1x8x32xf32, #tpu.memory_space<vmem>>, vector<1x8x32xf32>
    %3 = vector.shape_cast %2 : vector<1x8x32xf32> to vector<8x32xf32>
    %4 = arith.addf %1, %3 : vector<8x32xf32>
    %c0_5 = arith.constant 0 : index
    %c0_6 = arith.constant 0 : index
    %c0_7 = arith.constant 0 : index
    %5 = vector.load %arg4[%c0_5, %c0_6, %c0_7] : memref<1x8x32xf32, #tpu.memory_space<vmem>>, vector<1x8x32xf32>
    %6 = vector.shape_cast %5 : vector<1x8x32xf32> to vector<8x32xf32>
    %c0_8 = arith.constant 0 : index
    %c0_9 = arith.constant 0 : index
    %c0_10 = arith.constant 0 : index
    %7 = vector.load %arg5[%c0_8, %c0_9, %c0_10] : memref<1x8x32xf32, #tpu.memory_space<vmem>>, vector<1x8x32xf32>
    %8 = vector.shape_cast %7 : vector<1x8x32xf32> to vector<8x32xf32>
    %9 = arith.addf %6, %8 : vector<8x32xf32>
    %10 = arith.truncf %4 : vector<8x32xf32> to vector<8x32xbf16>
    %c0_11 = arith.constant 0 : index
    %c0_12 = arith.constant 0 : index
    %11 = vector.load %arg6[%c0_11, %c0_12] : memref<32x32xbf16, #tpu.memory_space<vmem>>, vector<32x32xbf16>
    %cst = arith.constant dense<0.000000e+00> : vector<8x32xf32>
    %12 = tpu.matmul %10, %11, %cst {dimension_numbers = #tpu.dot_dimension_numbers<[1], [0], [0], [1], [0, 0, 1, 1], [], []>} : vector<8x32xbf16>, vector<32x32xbf16>, vector<8x32xf32> -> vector<8x32xf32>
    %c0_13 = arith.constant 0 : index
    %c0_14 = arith.constant 0 : index
    %13 = vector.load %arg7[%c0_13, %c0_14] : memref<1x32xf32, #tpu.memory_space<vmem>>, vector<1x32xf32>
    %14 = vector.broadcast %13 : vector<1x32xf32> to vector<8x32xf32>
    %15 = arith.addf %12, %14 : vector<8x32xf32>
    %16 = arith.truncf %9 : vector<8x32xf32> to vector<8x32xbf16>
    %c0_15 = arith.constant 0 : index
    %c0_16 = arith.constant 0 : index
    %17 = vector.load %arg8[%c0_15, %c0_16] : memref<32x32xbf16, #tpu.memory_space<vmem>>, vector<32x32xbf16>
    %cst_17 = arith.constant dense<0.000000e+00> : vector<8x32xf32>
    %18 = tpu.matmul %16, %17, %cst_17 {dimension_numbers = #tpu.dot_dimension_numbers<[1], [0], [0], [1], [0, 0, 1, 1], [], []>} : vector<8x32xbf16>, vector<32x32xbf16>, vector<8x32xf32> -> vector<8x32xf32>
    %c0_18 = arith.constant 0 : index
    %c0_19 = arith.constant 0 : index
    %19 = vector.load %arg9[%c0_18, %c0_19] : memref<1x32xf32, #tpu.memory_space<vmem>>, vector<1x32xf32>
    %20 = vector.broadcast %19 : vector<1x32xf32> to vector<8x32xf32>
    %21 = arith.addf %18, %20 : vector<8x32xf32>
    %22 = arith.truncf %6 : vector<8x32xf32> to vector<8x32xbf16>
    %c0_20 = arith.constant 0 : index
    %c0_21 = arith.constant 0 : index
    %23 = vector.load %arg10[%c0_20, %c0_21] : memref<32x32xbf16, #tpu.memory_space<vmem>>, vector<32x32xbf16>
    %cst_22 = arith.constant dense<0.000000e+00> : vector<8x32xf32>
    %24 = tpu.matmul %22, %23, %cst_22 {dimension_numbers = #tpu.dot_dimension_numbers<[1], [0], [0], [1], [0, 0, 1, 1], [], []>} : vector<8x32xbf16>, vector<32x32xbf16>, vector<8x32xf32> -> vector<8x32xf32>
    %c0_23 = arith.constant 0 : index
    %c0_24 = arith.constant 0 : index
    %25 = vector.load %arg11[%c0_23, %c0_24] : memref<1x32xf32, #tpu.memory_space<vmem>>, vector<1x32xf32>
    %26 = vector.broadcast %25 : vector<1x32xf32> to vector<8x32xf32>
    %27 = arith.addf %24, %26 : vector<8x32xf32>
    %28 = vector.extract_strided_slice %15 {offsets = [0, 0], sizes = [8, 8], strides = [1, 1]} : vector<8x32xf32> to vector<8x8xf32>
    %29 = arith.truncf %28 : vector<8x8xf32> to vector<8x8xbf16>
    %30 = vector.extract_strided_slice %21 {offsets = [0, 0], sizes = [8, 8], strides = [1, 1]} : vector<8x32xf32> to vector<8x8xf32>
    %31 = arith.truncf %30 : vector<8x8xf32> to vector<8x8xbf16>
    %32 = vector.extract_strided_slice %27 {offsets = [0, 0], sizes = [8, 8], strides = [1, 1]} : vector<8x32xf32> to vector<8x8xf32>
    %33 = arith.truncf %32 : vector<8x8xf32> to vector<8x8xbf16>
    %cst_25 = arith.constant dense<0.000000e+00> : vector<8x8xf32>
    %34 = tpu.matmul %29, %31, %cst_25 {dimension_numbers = #tpu.dot_dimension_numbers<[1], [1], [0], [0], [0, 0, 1, 0], [], []>} : vector<8x8xbf16>, vector<8x8xbf16>, vector<8x8xf32> -> vector<8x8xf32>
    %cst_26 = arith.constant dense<0xFF800000> : vector<8xf32>
    %35 = vector.multi_reduction <maximumf>, %34, %cst_26 [1] : vector<8x8xf32> to vector<8xf32>
    %36 = vector.shape_cast %35 : vector<8xf32> to vector<8x1xf32>
    %37 = vector.broadcast %36 : vector<8x1xf32> to vector<8x8xf32>
    %38 = arith.subf %34, %37 : vector<8x8xf32>
    %39 = math.exp %38 : vector<8x8xf32>
    %cst_27 = arith.constant dense<0.000000e+00> : vector<8xf32>
    %40 = vector.multi_reduction <add>, %39, %cst_27 [1] : vector<8x8xf32> to vector<8xf32>
    %41 = vector.shape_cast %40 : vector<8xf32> to vector<8x1xf32>
    %42 = arith.truncf %39 : vector<8x8xf32> to vector<8x8xbf16>
    %cst_28 = arith.constant dense<0.000000e+00> : vector<8x8xf32>
    %43 = tpu.matmul %42, %33, %cst_28 {dimension_numbers = #tpu.dot_dimension_numbers<[1], [0], [0], [1], [0, 0, 1, 1], [], []>} : vector<8x8xbf16>, vector<8x8xbf16>, vector<8x8xf32> -> vector<8x8xf32>
    %44 = tpu.reciprocal %41 {approx = true} : vector<8x1xf32> -> vector<8x1xf32>
    %45 = vector.broadcast %44 : vector<8x1xf32> to vector<8x8xf32>
    %46 = arith.mulf %43, %45 : vector<8x8xf32>
    %47 = vector.extract_strided_slice %15 {offsets = [0, 8], sizes = [8, 8], strides = [1, 1]} : vector<8x32xf32> to vector<8x8xf32>
    %48 = arith.truncf %47 : vector<8x8xf32> to vector<8x8xbf16>
    %49 = vector.extract_strided_slice %21 {offsets = [0, 8], sizes = [8, 8], strides = [1, 1]} : vector<8x32xf32> to vector<8x8xf32>
    %50 = arith.truncf %49 : vector<8x8xf32> to vector<8x8xbf16>
    %51 = vector.extract_strided_slice %27 {offsets = [0, 8], sizes = [8, 8], strides = [1, 1]} : vector<8x32xf32> to vector<8x8xf32>
    %52 = arith.truncf %51 : vector<8x8xf32> to vector<8x8xbf16>
    %cst_29 = arith.constant dense<0.000000e+00> : vector<8x8xf32>
    %53 = tpu.matmul %48, %50, %cst_29 {dimension_numbers = #tpu.dot_dimension_numbers<[1], [1], [0], [0], [0, 0, 1, 0], [], []>} : vector<8x8xbf16>, vector<8x8xbf16>, vector<8x8xf32> -> vector<8x8xf32>
    %cst_30 = arith.constant dense<0xFF800000> : vector<8xf32>
    %54 = vector.multi_reduction <maximumf>, %53, %cst_30 [1] : vector<8x8xf32> to vector<8xf32>
    %55 = vector.shape_cast %54 : vector<8xf32> to vector<8x1xf32>
    %56 = vector.broadcast %55 : vector<8x1xf32> to vector<8x8xf32>
    %57 = arith.subf %53, %56 : vector<8x8xf32>
    %58 = math.exp %57 : vector<8x8xf32>
    %cst_31 = arith.constant dense<0.000000e+00> : vector<8xf32>
    %59 = vector.multi_reduction <add>, %58, %cst_31 [1] : vector<8x8xf32> to vector<8xf32>
    %60 = vector.shape_cast %59 : vector<8xf32> to vector<8x1xf32>
    %61 = arith.truncf %58 : vector<8x8xf32> to vector<8x8xbf16>
    %cst_32 = arith.constant dense<0.000000e+00> : vector<8x8xf32>
    %62 = tpu.matmul %61, %52, %cst_32 {dimension_numbers = #tpu.dot_dimension_numbers<[1], [0], [0], [1], [0, 0, 1, 1], [], []>} : vector<8x8xbf16>, vector<8x8xbf16>, vector<8x8xf32> -> vector<8x8xf32>
    %63 = tpu.reciprocal %60 {approx = true} : vector<8x1xf32> -> vector<8x1xf32>
    %64 = vector.broadcast %63 : vector<8x1xf32> to vector<8x8xf32>
    %65 = arith.mulf %62, %64 : vector<8x8xf32>
    %66 = vector.extract_strided_slice %15 {offsets = [0, 16], sizes = [8, 8], strides = [1, 1]} : vector<8x32xf32> to vector<8x8xf32>
    %67 = arith.truncf %66 : vector<8x8xf32> to vector<8x8xbf16>
    %68 = vector.extract_strided_slice %21 {offsets = [0, 16], sizes = [8, 8], strides = [1, 1]} : vector<8x32xf32> to vector<8x8xf32>
    %69 = arith.truncf %68 : vector<8x8xf32> to vector<8x8xbf16>
    %70 = vector.extract_strided_slice %27 {offsets = [0, 16], sizes = [8, 8], strides = [1, 1]} : vector<8x32xf32> to vector<8x8xf32>
    %71 = arith.truncf %70 : vector<8x8xf32> to vector<8x8xbf16>
    %cst_33 = arith.constant dense<0.000000e+00> : vector<8x8xf32>
    %72 = tpu.matmul %67, %69, %cst_33 {dimension_numbers = #tpu.dot_dimension_numbers<[1], [1], [0], [0], [0, 0, 1, 0], [], []>} : vector<8x8xbf16>, vector<8x8xbf16>, vector<8x8xf32> -> vector<8x8xf32>
    %cst_34 = arith.constant dense<0xFF800000> : vector<8xf32>
    %73 = vector.multi_reduction <maximumf>, %72, %cst_34 [1] : vector<8x8xf32> to vector<8xf32>
    %74 = vector.shape_cast %73 : vector<8xf32> to vector<8x1xf32>
    %75 = vector.broadcast %74 : vector<8x1xf32> to vector<8x8xf32>
    %76 = arith.subf %72, %75 : vector<8x8xf32>
    %77 = math.exp %76 : vector<8x8xf32>
    %cst_35 = arith.constant dense<0.000000e+00> : vector<8xf32>
    %78 = vector.multi_reduction <add>, %77, %cst_35 [1] : vector<8x8xf32> to vector<8xf32>
    %79 = vector.shape_cast %78 : vector<8xf32> to vector<8x1xf32>
    %80 = arith.truncf %77 : vector<8x8xf32> to vector<8x8xbf16>
    %cst_36 = arith.constant dense<0.000000e+00> : vector<8x8xf32>
    %81 = tpu.matmul %80, %71, %cst_36 {dimension_numbers = #tpu.dot_dimension_numbers<[1], [0], [0], [1], [0, 0, 1, 1], [], []>} : vector<8x8xbf16>, vector<8x8xbf16>, vector<8x8xf32> -> vector<8x8xf32>
    %82 = tpu.reciprocal %79 {approx = true} : vector<8x1xf32> -> vector<8x1xf32>
    %83 = vector.broadcast %82 : vector<8x1xf32> to vector<8x8xf32>
    %84 = arith.mulf %81, %83 : vector<8x8xf32>
    %85 = vector.extract_strided_slice %15 {offsets = [0, 24], sizes = [8, 8], strides = [1, 1]} : vector<8x32xf32> to vector<8x8xf32>
    %86 = arith.truncf %85 : vector<8x8xf32> to vector<8x8xbf16>
    %87 = vector.extract_strided_slice %21 {offsets = [0, 24], sizes = [8, 8], strides = [1, 1]} : vector<8x32xf32> to vector<8x8xf32>
    %88 = arith.truncf %87 : vector<8x8xf32> to vector<8x8xbf16>
    %89 = vector.extract_strided_slice %27 {offsets = [0, 24], sizes = [8, 8], strides = [1, 1]} : vector<8x32xf32> to vector<8x8xf32>
    %90 = arith.truncf %89 : vector<8x8xf32> to vector<8x8xbf16>
    %cst_37 = arith.constant dense<0.000000e+00> : vector<8x8xf32>
    %91 = tpu.matmul %86, %88, %cst_37 {dimension_numbers = #tpu.dot_dimension_numbers<[1], [1], [0], [0], [0, 0, 1, 0], [], []>} : vector<8x8xbf16>, vector<8x8xbf16>, vector<8x8xf32> -> vector<8x8xf32>
    %cst_38 = arith.constant dense<0xFF800000> : vector<8xf32>
    %92 = vector.multi_reduction <maximumf>, %91, %cst_38 [1] : vector<8x8xf32> to vector<8xf32>
    %93 = vector.shape_cast %92 : vector<8xf32> to vector<8x1xf32>
    %94 = vector.broadcast %93 : vector<8x1xf32> to vector<8x8xf32>
    %95 = arith.subf %91, %94 : vector<8x8xf32>
    %96 = math.exp %95 : vector<8x8xf32>
    %cst_39 = arith.constant dense<0.000000e+00> : vector<8xf32>
    %97 = vector.multi_reduction <add>, %96, %cst_39 [1] : vector<8x8xf32> to vector<8xf32>
    %98 = vector.shape_cast %97 : vector<8xf32> to vector<8x1xf32>
    %99 = arith.truncf %96 : vector<8x8xf32> to vector<8x8xbf16>
    %cst_40 = arith.constant dense<0.000000e+00> : vector<8x8xf32>
    %100 = tpu.matmul %99, %90, %cst_40 {dimension_numbers = #tpu.dot_dimension_numbers<[1], [0], [0], [1], [0, 0, 1, 1], [], []>} : vector<8x8xbf16>, vector<8x8xbf16>, vector<8x8xf32> -> vector<8x8xf32>
    %101 = tpu.reciprocal %98 {approx = true} : vector<8x1xf32> -> vector<8x1xf32>
    %102 = vector.broadcast %101 : vector<8x1xf32> to vector<8x8xf32>
    %103 = arith.mulf %100, %102 : vector<8x8xf32>
    %104 = tpu.concatenate %46, %65, %84, %103 in 1 : vector<8x8xf32>, vector<8x8xf32>, vector<8x8xf32>, vector<8x8xf32> -> vector<8x32xf32>
    %105 = arith.truncf %104 : vector<8x32xf32> to vector<8x32xbf16>
    %c0_41 = arith.constant 0 : index
    %c0_42 = arith.constant 0 : index
    %106 = vector.load %arg12[%c0_41, %c0_42] : memref<32x32xbf16, #tpu.memory_space<vmem>>, vector<32x32xbf16>
    %cst_43 = arith.constant dense<0.000000e+00> : vector<8x32xf32>
    %107 = tpu.matmul %105, %106, %cst_43 {dimension_numbers = #tpu.dot_dimension_numbers<[1], [0], [0], [1], [0, 0, 1, 1], [], []>} : vector<8x32xbf16>, vector<32x32xbf16>, vector<8x32xf32> -> vector<8x32xf32>
    %c0_44 = arith.constant 0 : index
    %c0_45 = arith.constant 0 : index
    %108 = vector.load %arg13[%c0_44, %c0_45] : memref<1x32xf32, #tpu.memory_space<vmem>>, vector<1x32xf32>
    %109 = vector.broadcast %108 : vector<1x32xf32> to vector<8x32xf32>
    %110 = arith.addf %107, %109 : vector<8x32xf32>
    %111 = arith.addf %1, %110 : vector<8x32xf32>
    %cst_46 = arith.constant dense<0.000000e+00> : vector<8xf32>
    %112 = vector.multi_reduction <add>, %111, %cst_46 [1] : vector<8x32xf32> to vector<8xf32>
    %113 = vector.shape_cast %112 : vector<8xf32> to vector<8x1xf32>
    %cst_47 = arith.constant 3.200000e+01 : f32
    %114 = vector.broadcast %cst_47 : f32 to vector<8x1xf32>
    %115 = arith.divf %113, %114 : vector<8x1xf32>
    %116 = vector.broadcast %115 : vector<8x1xf32> to vector<8x32xf32>
    %117 = arith.subf %111, %116 : vector<8x32xf32>
    %118 = arith.mulf %117, %117 : vector<8x32xf32>
    %cst_48 = arith.constant dense<0.000000e+00> : vector<8xf32>
    %119 = vector.multi_reduction <add>, %118, %cst_48 [1] : vector<8x32xf32> to vector<8xf32>
    %120 = vector.shape_cast %119 : vector<8xf32> to vector<8x1xf32>
    %cst_49 = arith.constant 3.200000e+01 : f32
    %121 = vector.broadcast %cst_49 : f32 to vector<8x1xf32>
    %122 = arith.divf %120, %121 : vector<8x1xf32>
    %123 = vector.broadcast %115 : vector<8x1xf32> to vector<8x32xf32>
    %124 = arith.subf %111, %123 : vector<8x32xf32>
    %cst_50 = arith.constant 9.99999974E-6 : f32
    %125 = vector.broadcast %cst_50 : f32 to vector<8x1xf32>
    %126 = arith.addf %122, %125 : vector<8x1xf32>
    %127 = math.rsqrt %126 : vector<8x1xf32>
    %128 = vector.broadcast %127 : vector<8x1xf32> to vector<8x32xf32>
    %129 = arith.mulf %124, %128 : vector<8x32xf32>
    %c0_51 = arith.constant 0 : index
    %c0_52 = arith.constant 0 : index
    %130 = vector.load %arg14[%c0_51, %c0_52] : memref<1x32xf32, #tpu.memory_space<vmem>>, vector<1x32xf32>
    %131 = vector.broadcast %130 : vector<1x32xf32> to vector<8x32xf32>
    %132 = arith.mulf %129, %131 : vector<8x32xf32>
    %c0_53 = arith.constant 0 : index
    %c0_54 = arith.constant 0 : index
    %133 = vector.load %arg15[%c0_53, %c0_54] : memref<1x32xf32, #tpu.memory_space<vmem>>, vector<1x32xf32>
    %134 = vector.broadcast %133 : vector<1x32xf32> to vector<8x32xf32>
    %135 = arith.addf %132, %134 : vector<8x32xf32>
    %c0_55 = arith.constant 0 : index
    %c0_56 = arith.constant 0 : index
    %c0_57 = arith.constant 0 : index
    %136 = vector.load %arg16[%c0_55, %c0_56, %c0_57] : memref<1x8x32xf32, #tpu.memory_space<vmem>>, vector<1x8x32xf32>
    %137 = vector.shape_cast %136 : vector<1x8x32xf32> to vector<8x32xf32>
    %138 = vector.shape_cast %135 : vector<8x32xf32> to vector<1x8x32xf32>
    tpu.vector_store %arg16[%c0_55, %c0_56, %c0_57], %138 {strides = array<i32>} : memref<1x8x32xf32, #tpu.memory_space<vmem>>, vector<1x8x32xf32>,
    return
  }
  func.func @transform_0(%arg0: i32, %arg1: i32) -> (i32, i32, i32) {
    %c0_i32 = arith.constant 0 : i32
    %c0_i32_0 = arith.constant 0 : i32
    return %arg0, %arg1, %c0_i32 : i32, i32, i32
  }
  func.func @transform_1(%arg0: i32, %arg1: i32) -> (i32, i32, i32) {
    %c0_i32 = arith.constant 0 : i32
    %c0_i32_0 = arith.constant 0 : i32
    return %arg0, %arg1, %c0_i32 : i32, i32, i32
  }
  func.func @transform_2(%arg0: i32, %arg1: i32) -> (i32, i32, i32) {
    %c0_i32 = arith.constant 0 : i32
    %c0_i32_0 = arith.constant 0 : i32
    %c0_i32_1 = arith.constant 0 : i32
    return %arg0, %c0_i32, %c0_i32_0 : i32, i32, i32
  }
  func.func @transform_3(%arg0: i32, %arg1: i32) -> (i32, i32, i32) {
    %c0_i32 = arith.constant 0 : i32
    %c0_i32_0 = arith.constant 0 : i32
    %c0_i32_1 = arith.constant 0 : i32
    return %arg0, %c0_i32, %c0_i32_0 : i32, i32, i32
  }
  func.func @transform_4(%arg0: i32, %arg1: i32) -> (i32, i32) {
    %c0_i32 = arith.constant 0 : i32
    %c0_i32_0 = arith.constant 0 : i32
    %c0_i32_1 = arith.constant 0 : i32
    return %c0_i32, %c0_i32_0 : i32, i32
  }
  func.func @transform_5(%arg0: i32, %arg1: i32) -> (i32, i32) {
    %c0_i32 = arith.constant 0 : i32
    %c0_i32_0 = arith.constant 0 : i32
    %c0_i32_1 = arith.constant 0 : i32
    return %c0_i32, %c0_i32_0 : i32, i32
  }
  func.func @transform_6(%arg0: i32, %arg1: i32) -> (i32, i32) {
    %c0_i32 = arith.constant 0 : i32
    %c0_i32_0 = arith.constant 0 : i32
    %c0_i32_1 = arith.constant 0 : i32
    return %c0_i32, %c0_i32_0 : i32, i32
  }
  func.func @transform_7(%arg0: i32, %arg1: i32) -> (i32, i32) {
    %c0_i32 = arith.constant 0 : i32
    %c0_i32_0 = arith.constant 0 : i32
    %c0_i32_1 = arith.constant 0 : i32
    return %c0_i32, %c0_i32_0 : i32, i32
  }
  func.func @transform_8(%arg0: i32, %arg1: i32) -> (i32, i32) {
    %c0_i32 = arith.constant 0 : i32
    %c0_i32_0 = arith.constant 0 : i32
    %c0_i32_1 = arith.constant 0 : i32
    return %c0_i32, %c0_i32_0 : i32, i32
  }
  func.func @transform_9(%arg0: i32, %arg1: i32) -> (i32, i32) {
    %c0_i32 = arith.constant 0 : i32
    %c0_i32_0 = arith.constant 0 : i32
    %c0_i32_1 = arith.constant 0 : i32
    return %c0_i32, %c0_i32_0 : i32, i32
  }
  func.func @transform_10(%arg0: i32, %arg1: i32) -> (i32, i32) {
    %c0_i32 = arith.constant 0 : i32
    %c0_i32_0 = arith.constant 0 : i32
    %c0_i32_1 = arith.constant 0 : i32
    return %c0_i32, %c0_i32_0 : i32, i32
  }
  func.func @transform_11(%arg0: i32, %arg1: i32) -> (i32, i32) {
    %c0_i32 = arith.constant 0 : i32
    %c0_i32_0 = arith.constant 0 : i32
    %c0_i32_1 = arith.constant 0 : i32
    return %c0_i32, %c0_i32_0 : i32, i32
  }
  func.func @transform_12(%arg0: i32, %arg1: i32) -> (i32, i32) {
    %c0_i32 = arith.constant 0 : i32
    %c0_i32_0 = arith.constant 0 : i32
    %c0_i32_1 = arith.constant 0 : i32
    return %c0_i32, %c0_i32_0 : i32, i32
  }
  func.func @transform_13(%arg0: i32, %arg1: i32) -> (i32, i32) {
    %c0_i32 = arith.constant 0 : i32
    %c0_i32_0 = arith.constant 0 : i32
    %c0_i32_1 = arith.constant 0 : i32
    return %c0_i32, %c0_i32_0 : i32, i32
  }
  func.func @transform_14(%arg0: i32, %arg1: i32) -> (i32, i32, i32) {
    %c0_i32 = arith.constant 0 : i32
    %c0_i32_0 = arith.constant 0 : i32
    return %arg0, %arg1, %c0_i32 : i32, i32, i32
  }
}

</mosaic_0001>

<bundles_post_ra>
// kernel: tpu_custom_call.1
= control target key start
LH: loop header
LB: loop body
LE: loop exit
PB: predicated region body
PF: predicated region fallthrough
CT: control target
= control target key end

     0   :  { %s2743_s0 = inlined_call_operand.hbm [shape: f32[2,8,32], index: 0, kind: input, shape index: {}]   ;;  %s2744_s1 = inlined_call_operand.hbm [shape: f32[2,8,32], index: 1, kind: input, shape index: {}]   ;;  %s2745_s2 = inlined_call_operand.hbm [shape: f32[2,8,32], index: 2, kind: input, shape index: {}]   ;;  %s2746_s3 = inlined_call_operand.hbm [shape: f32[2,8,32], index: 3, kind: input, shape index: {}]   ;;  %s2747_s4 = inlined_call_operand.hbm [shape: bf16[32,32], index: 4, kind: input, shape index: {}]   ;;  %s2748_s5 = inlined_call_operand.vmem [shape: f32[1,32], index: 5, kind: input, shape index: {}]   ;;  %s2749_s6 = inlined_call_operand.hbm [shape: bf16[32,32], index: 6, kind: input, shape index: {}]   ;;  %s2750_s7 = inlined_call_operand.vmem [shape: f32[1,32], index: 7, kind: input, shape index: {}]   ;;  %s2751_s8 = inlined_call_operand.hbm [shape: bf16[32,32], index: 8, kind: input, shape index: {}]   ;;  %s2752_s9 = inlined_call_operand.hbm [shape: f32[1,32], index: 9, kind: input, shape index: {}]   ;;  %s2753_s10 = inlined_call_operand.vmem [shape: bf16[32,32], index: 10, kind: input, shape index: {}]   ;;  %s2754_s11 = inlined_call_operand.vmem [shape: f32[1,32], index: 11, kind: input, shape index: {}]   ;;  %s2755_s12 = inlined_call_operand.vmem [shape: f32[1,32], index: 12, kind: input, shape index: {}]   ;;  %s2756_s13 = inlined_call_operand.vmem [shape: f32[1,32], index: 13, kind: input, shape index: {}]   ;;  %s2757_s14 = inlined_call_operand.hbm [shape: f32[2,8,32], index: 14, kind: output, shape index: {}]  }
   0x1   :  { %2772 = sst [smem:[#allocation31_spill]] %s2743_s0 }
   0x2   :  { %2773 = sst [smem:[#allocation32_spill]] %s2744_s1 }
   0x3   :  { %2774 = sst [smem:[#allocation33_spill]] %s2747_s4 }
   0x4   :  { %2775 = sst [smem:[#allocation34_spill]] %s2749_s6 }
   0x5   :  { %2776 = sst [smem:[#allocation35_spill]] %s2755_s12 }
   0x6   :  { %2777 = sst [smem:[#allocation36_spill]] %s2756_s13 }
   0x7   :  { %2778 = sst [smem:[#allocation37_spill]] %s2757_s14 }
   0x8   :  { %19 = vsyncpa [#allocation3], 0 }
   0x9   :  { %21 = vsyncpa [#allocation3 + $0x1], 0 }
   0xa   :  { %22 = vsyncpa [#allocation6], 0 }
   0xb   :  { %24 = vsyncpa [#allocation6 + $0x1], 0 }
   0xc   :  { %25 = vsyncpa [#allocation9], 0 }
   0xd   :  { %27 = vsyncpa [#allocation9 + $0x1], 0 }
   0xe   :  { %28 = vsyncpa [#allocation12], 0 }
   0xf   :  { %29 = vsyncpa [#allocation15], 0 }
  0x10   :  { %30 = vsyncpa [#allocation4], 0 }
  0x11   :  { %32 = vsyncpa [#allocation4 + $0x1], 0  ;;  %s2364_s29 = smov 0   ;;  %s2366_s30 = smov 0  }
  0x12   :  { %s2368_s15 = smov 0   ;;  %s2370_s16 = smov 0  }
  0x13   :  { %s2372_s17 = smov 0   ;;  %s2374_s18 = smov 0  }
  0x14 LB: > { %2779 = sst [smem:[#allocation24_spill]] %s2248_s29  ;;  %s2395_s19 = sadd.s32 4294967295, %s2268_s18   ;;  %s2268_s18 = sphi %s2374_s18, %s38_s18   ;;  %s2264_s17 = sphi %s2372_s17, %s2822_s17   ;;  %s2260_s16 = sphi %s2370_s16, %s2821_s16   ;;  %s2256_s15 = sphi %s2368_s15, %s2825_s15   ;;  %s2252_s30 = sphi %s2366_s30, %s2824_s30   ;;  %s2248_s29 = sphi %s2364_s29, %s2823_s29  }
  0x15   : > { %2780 = sst [smem:[#allocation25_spill]] %s2260_s16  ;;  %s1635_s20 = sadd.s32 4294967294, %s2268_s18  }
  0x16   : > { %2781 = sst [smem:[#allocation26_spill]] %s2264_s17  ;;  %p72_p0 = scmp.ne.s32.totalorder %s2252_s30, %s2248_s29 }
  0x17   : > { %p2761_p1 = scmp.eq.s32.totalorder %s2395_s19, 0  ;;  %p388_p2 = scmp.eq.s32.totalorder %s2395_s19, 1 }
  0x18   : > { %p394_p3 = scmp.eq.s32.totalorder %s1635_s20, 1  ;;  %p1636_p5 = scmp.ge.s32.totalorder %s2268_s18, 1 }
  0x19   : > { %p2404_p4 = por %p2761_p1, %p72_p0  ;;  %p401_p7 = scmp.lt.s32.totalorder %s2268_s18, 3 }
  0x1a   : > { %p2409_p6 = por %p394_p3, %p72_p0  ;;  %s2270_s24 = smov [#allocation10]  }
  0x1b   : > { %p2414_p8 = pnand %p1636_p5, %p401_p7  ;;  %s413_s25 = sshll.u32 %s2270_s24, 4  ;;  %s414_s25 = int_to_ptr.vmem [resolvable:$true] %s413_s25 }
  0x1c   : > { %s2783_s22 = scalar_select %p2409_p6, 1, 0 }
  0x1d   : > { %p1824_p9 = pneg %p2414_p8  ;;  %s2271_s27 = smov [#allocation11]  }
  0x1e   : > { %2784 = sst [smem:[#allocation27_spill]] %s2783_s22  ;;  %s429_s28 = sshll.u32 %s2271_s27, 4  ;;  %s430_s28 = int_to_ptr.vmem [resolvable:$true] %s429_s28 }
  0x1f   : > { %p2423_p11 = pnand %p1824_p9, %p2761_p1  ;;  %s1963_s20 = scalar_lea.vmem %s414_s25, 256 }
  0x20   : > { %p1964_p13 = scmp.ne.s32.totalorder %s414_s25, %s1963_s20  ;;  %p1971_p5 = scmp.lt.s32.totalorder %s414_s25, %s414_s25 }
  0x21   : > { %p2769_p12 = pneg %p2423_p11  ;;  %p1972_p7 = scmp.lt.s32.totalorder %s1963_s20, %s1963_s20 }
  0x23   : > { %p1966_p0 = pnand %p1964_p13, %p2769_p12  ;;  %p1973_p10 = por %p1972_p7, %p1971_p5 }
  0x25   : > { %p1967_p3 = pneg %p1966_p0 }
  0x27   : > { %p1974_p9 = pnand %p1973_p10, %p1967_p3 }
  0x29   : > { %1977 = shalt.err (!%p1974_p9)
}
  0x2a   : > { %s2762_s24 = smov 64   ;;  %s2763_s22 = smov 4  }
  0x2b   : > { %s2787_s4 = sld [smem:[#allocation33_spill]]  ;;  %s1989_s14 = scalar_lea.vmem %s430_s28, 256 }
  0x2c   : > { %p1990_p13 = scmp.ne.s32.totalorder %s430_s28, %s1989_s14  ;;  %p1997_p10 = scmp.lt.s32.totalorder %s430_s28, %s430_s28 }
  0x2d   : > { %p1998_p3 = scmp.lt.s32.totalorder %s1989_s14, %s1989_s14 }
  0x2e   : > { %p1992_p0 = pnand %p1990_p13, %p2769_p12 }
  0x2f   : > { %p1999_p7 = por %p1998_p3, %p1997_p10 }
  0x30   : > { %p1993_p5 = pneg %p1992_p0 }
  0x31   : > { %1827 = dma.hbm_to_vmem [thread:$0]  (!%p2423_p11), %s2787_s4, 256, %s414_s25, [#allocation9], %s2762_s24, %s2762_s24, %s2763_s22  }
  0x32   : > { %p2000_p9 = pnand %p1999_p7, %p1993_p5 }
  0x34   : > { %2003 = shalt.err (!%p2000_p9)
}
  0x35   : > { %s2788_s6 = sld [smem:[#allocation34_spill]]  ;;  %s50_s14 = sadd.s32 1, %s2264_s17 }
  0x36   : > { %s59_s29 = sadd.s32 1, %s2256_s15  ;;  %p52_p13 = scmp.ge.s32.totalorder %s50_s14, 2 }
  0x37   : > { %p66_p0 = scmp.ne.s32.totalorder %s2256_s15, %s2252_s30  ;;  %p67_p5 = scmp.eq.s32.totalorder %s2268_s18, 0 }
  0x38   : > { %p1858_p10 = scmp.lt.s32.totalorder %s2268_s18, 2  ;;  %s2827_s14 = smov (%p52_p13, %s50_s14), 0 }
  0x39   : > { %2789 = sst [smem:[#allocation28_spill]] %s2827_s14  ;;  %p68_p3 = por %p67_p5, %p66_p0 }
  0x3a   : > { %p2461_p7 = por %p388_p2, %p66_p0  ;;  %s54_s25 = ssub.s32 %s2264_s17, %s2827_s14 }
  0x3b   : > { %1830 = dma.hbm_to_vmem [thread:$0]  (!%p2423_p11), %s2788_s6, 256, %s430_s28, [#allocation12], %s2762_s24, %s2762_s24, %s2763_s22  }
  0x3c   : > { %s2790_s13 = scalar_select %p2461_p7, 1, 0 }
  0x3d   : > { %s2765_s28 = sand.u32 1, %s2256_s15   ;;  %p57_p9 = scmp.eq.s32.totalorder %s54_s25, 0 }
  0x3e   : > { %2791 = sst [smem:[#allocation29_spill]] %s2790_s13  ;;  %s2470_s27 = sshll.u32 %s2765_s28, 3 }
  0x3f   : > { %s2473_s20 = sshll.u32 %s2264_s17, 7  ;;  %p2475_p1 = pnand %p1858_p10, %p68_p3 }
  0x40   : > { %s2480_s22 = scalar_select %p57_p9, %s2256_s15, %s59_s29  }
  0x41   : > { %s2770_s4 = sand.u32 1, %s2268_s18   ;;  %s2794_s1 = sld [smem:[#allocation32_spill]] }
  0x42   : > { %2793 = sst [smem:[#allocation30_spill]] %s2480_s22  ;;  %s505_s12 = scalar_lea.vmem [#allocation5], %s2470_s27 }
  0x43   : > { %s513_s28 = sshll.u32 %s505_s12, 4  ;;  %s2490_s17 = scalar_lea.sflag [#allocation6], %s2770_s4  ;;  %s514_s28 = int_to_ptr.vmem [resolvable:$true] %s513_s28 }
  0x44   : > { %p2771_p2 = pneg %p2475_p1  ;;  %s2017_s13 = scalar_lea.vmem %s514_s28, 128 }
  0x45   : > { %p2018_p13 = scmp.ne.s32.totalorder %s514_s28, %s2017_s13  ;;  %s2274_s29 = smov [#allocation5]  }
  0x46   : > { %s2022_s22 = sshll.u32 %s2274_s29, 4  ;;  %s2023_s22 = int_to_ptr.vmem [resolvable:$false] %s2022_s22 }
  0x47   : > { %s511_s25 = scalar_lea.hbm %s2794_s1, %s2473_s20  ;;  %p2020_p0 = pnand %p2018_p13, %p2771_p2 }
  0x48   : > { %s2024_s16 = scalar_lea.vmem %s2023_s22, 256  ;;  %p2025_p10 = scmp.lt.s32.totalorder %s514_s28, %s2023_s22 }
  0x49   : > { %p2021_p5 = pneg %p2020_p0  ;;  %p2026_p3 = scmp.lt.s32.totalorder %s2024_s16, %s2017_s13 }
  0x4b   : > { %p2027_p9 = por %p2026_p3, %p2025_p10 }
  0x4d   : > { %p2028_p12 = pnand %p2027_p9, %p2021_p5 }
  0x4f   : > { %2031 = shalt.err (!%p2028_p12)
}
  0x50   : > { %1843 = dma.hbm_to_vmem [thread:$0]  (!%p2475_p1), %s511_s25, 128, %s514_s28, %s2490_s17  }
  0x51   : > { %s2275_s6 = smov [#allocation13]   ;;  %s2276_s14 = smov [#allocation14]  }
  0x52   : > { %s445_s12 = sshll.u32 %s2275_s6, 4  ;;  %s459_s4 = sshll.u32 %s2276_s14, 4  ;;  %s446_s12 = int_to_ptr.vmem [resolvable:$true] %s445_s12  ;;  %s460_s4 = int_to_ptr.vmem [resolvable:$true] %s459_s4 }
  0x53   : > { %s2043_s1 = scalar_lea.vmem %s446_s12, 256  ;;  %p2795_p0 = pneg %p2423_p11 }
  0x54   : > { %p2044_p13 = scmp.ne.s32.totalorder %s446_s12, %s2043_s1  ;;  %p2051_p10 = scmp.lt.s32.totalorder %s446_s12, %s446_s12 }
  0x55   : > { %p2052_p5 = scmp.lt.s32.totalorder %s2043_s1, %s2043_s1 }
  0x56   : > { %p2046_p2 = pnand %p2044_p13, %p2795_p0 }
  0x57   : > { %p2053_p12 = por %p2052_p5, %p2051_p10 }
  0x58   : > { %p2047_p6 = pneg %p2046_p2 }
  0x5a   : > { %p2054_p3 = pnand %p2053_p12, %p2047_p6 }
  0x5c   : > { %2057 = shalt.err (!%p2054_p3)
}
  0x5d   : > { %s2796_s16 = smov 4   ;;  %s2797_s22 = smov 64  }
  0x5e   : > { %1833 = dma.hbm_to_vmem [thread:$0]  (!%p2423_p11), %s2751_s8, 256, %s446_s12, [#allocation12], %s2797_s22, %s2797_s22, %s2796_s16  }
  0x5f   : > { %s2069_s25 = scalar_lea.vmem %s460_s4, 16  ;;  %p2798_p13 = pmov %p2795_p0 }
  0x60   : > { %p2070_p9 = scmp.ne.s32.totalorder %s460_s4, %s2069_s25  ;;  %s2076_s1 = scalar_lea.vmem %s460_s4, 32 }
  0x61   : > { %p2077_p10 = scmp.lt.s32.totalorder %s460_s4, %s460_s4  ;;  %p2078_p6 = scmp.lt.s32.totalorder %s2076_s1, %s2069_s25 }
  0x62   : > { %p2072_p2 = pnand %p2070_p9, %p2798_p13 }
  0x63   : > { %p2079_p5 = por %p2078_p6, %p2077_p10 }
  0x64   : > { %p2073_p0 = pneg %p2072_p2 }
  0x66   : > { %p2080_p12 = pnand %p2079_p5, %p2073_p0 }
  0x68   : > { %2083 = shalt.err (!%p2080_p12)
}
  0x69   : > { %1836 = dma.hbm_to_vmem [thread:$0]  (!%p2423_p11), %s2752_s9, 16, %s460_s4, [#allocation15]  }
  0x6a   : > { %s2799_s0 = sld [smem:[#allocation31_spill]]  ;;  %s486_s22 = scalar_lea.vmem [#allocation2], %s2470_s27 }
  0x6b   : > { %s494_s13 = sshll.u32 %s486_s22, 4  ;;  %s2800_s28 = sand.u32 1, %s2256_s15   ;;  %s495_s13 = int_to_ptr.vmem [resolvable:$true] %s494_s13 }
  0x6c   : > { %s483_s25 = scalar_lea.sflag [#allocation3], %s2800_s28  ;;  %s2097_s1 = scalar_lea.vmem %s495_s13, 128 }
  0x6d   : > { %p2098_p3 = scmp.ne.s32.totalorder %s495_s13, %s2097_s1  ;;  %p2801_p9 = pneg %p2475_p1 }
  0x6e   : > { %s2277_s26 = smov [#allocation2]  }
  0x6f   : > { %p2100_p13 = pnand %p2098_p3, %p2801_p9  ;;  %s2102_s29 = sshll.u32 %s2277_s26, 4  ;;  %s2103_s29 = int_to_ptr.vmem [resolvable:$false] %s2102_s29 }
  0x70   : > { %s492_s16 = scalar_lea.hbm %s2799_s0, %s2473_s20  ;;  %s2104_s6 = scalar_lea.vmem %s2103_s29, 256 }
  0x71   : > { %p2101_p2 = pneg %p2100_p13  ;;  %p2105_p11 = scmp.lt.s32.totalorder %s495_s13, %s2103_s29 }
  0x72   : > { %p2106_p0 = scmp.lt.s32.totalorder %s2104_s6, %s2097_s1 }
  0x74   : > { %p2107_p10 = por %p2106_p0, %p2105_p11 }
  0x76   : > { %p2108_p6 = pnand %p2107_p10, %p2101_p2 }
  0x78   : > { %2111 = shalt.err (!%p2108_p6)
}
  0x79   : > { %1840 = dma.hbm_to_vmem [thread:$0]  (!%p2475_p1), %s492_s16, 128, %s495_s13, %s483_s25  }
  0x7a   : > { %s529_s14 = scalar_lea.hbm %s2745_s2, %s2473_s20  ;;  %s524_s22 = scalar_lea.vmem [#allocation7], %s2470_s27 }
  0x7b   : > { %s531_s28 = sshll.u32 %s524_s22, 4  ;;  %p2802_p12 = pmov %p2801_p9  ;;  %s532_s28 = int_to_ptr.vmem [resolvable:$true] %s531_s28 }
  0x7c   : > { %s2125_s26 = scalar_lea.vmem %s532_s28, 128  ;;  %s2278_s1 = smov [#allocation7]  }
  0x7d   : > { %p2126_p5 = scmp.ne.s32.totalorder %s532_s28, %s2125_s26  ;;  %s2130_s29 = sshll.u32 %s2278_s1, 4  ;;  %s2131_s29 = int_to_ptr.vmem [resolvable:$false] %s2130_s29 }
  0x7e   : > { %s2132_s6 = scalar_lea.vmem %s2131_s29, 256  ;;  %p2133_p13 = scmp.lt.s32.totalorder %s532_s28, %s2131_s29 }
  0x7f   : > { %p2128_p3 = pnand %p2126_p5, %p2802_p12  ;;  %p2134_p2 = scmp.lt.s32.totalorder %s2132_s6, %s2125_s26 }
  0x81   : > { %p2129_p9 = pneg %p2128_p3  ;;  %p2135_p11 = por %p2134_p2, %p2133_p13 }
  0x83   : > { %p2136_p0 = pnand %p2135_p11, %p2129_p9 }
  0x85   : > { %2139 = shalt.err (!%p2136_p0)
}
  0x86   : > { %1846 = dma.hbm_to_vmem [thread:$0]  (!%p2475_p1), %s529_s14, 128, %s532_s28, %s2490_s17  }
  0x87   : > { %s547_s25 = scalar_lea.hbm %s2746_s3, %s2473_s20  ;;  %s542_s4 = scalar_lea.vmem [#allocation8], %s2470_s27 }
  0x88   : > { %s549_s12 = sshll.u32 %s542_s4, 4  ;;  %s2803_s22 = sand.u32 1, %s2268_s18   ;;  %s550_s12 = int_to_ptr.vmem [resolvable:$true] %s549_s12 }
  0x89   : > { %s539_s26 = scalar_lea.sflag [#allocation9], %s2803_s22  ;;  %s2153_s1 = scalar_lea.vmem %s550_s12, 128 }
  0x8a   : > { %p2154_p10 = scmp.ne.s32.totalorder %s550_s12, %s2153_s1  ;;  %p2804_p6 = pmov %p2802_p12 }
  0x8b   : > { %s2279_s29 = smov [#allocation8]  }
  0x8c   : > { %p2156_p5 = pnand %p2154_p10, %p2804_p6  ;;  %s2158_s6 = sshll.u32 %s2279_s29, 4  ;;  %s2159_s6 = int_to_ptr.vmem [resolvable:$false] %s2158_s6 }
  0x8d   : > { %s2160_s0 = scalar_lea.vmem %s2159_s6, 256  ;;  %p2161_p3 = scmp.lt.s32.totalorder %s550_s12, %s2159_s6 }
  0x8e   : > { %p2157_p12 = pneg %p2156_p5  ;;  %p2162_p9 = scmp.lt.s32.totalorder %s2160_s0, %s2153_s1 }
  0x90   : > { %p2163_p13 = por %p2162_p9, %p2161_p3 }
  0x92   : > { %p2164_p2 = pnand %p2163_p13, %p2157_p12 }
  0x94   : > { %2167 = shalt.err (!%p2164_p2)
}
  0x95   : > { %1849 = dma.hbm_to_vmem [thread:$0]  (!%p2475_p1), %s547_s25, 128, %s550_s12, %s539_s26  }
  0x96   : > { %558 = sbr.rel (%p2414_p8) target bundleno = 1701 (0x6a5), region = 76  ;;  %s2557_s17 = sand.u32 (!%p2414_p8), 1, %s2252_s30  }
  0x97   : > { %s2560_s27 = sshll.u32 (!%p2414_p8), %s2557_s17, 3  ;;  %s561_s20 = scalar_lea.sflag (!%p2414_p8), [#allocation3], %s2557_s17 }
  0x98   : > { %s564_s0 = scalar_lea.vmem (!%p2414_p8), [#allocation2], %s2560_s27 }
  0x9b   : > { %2219 = dma.done.wait (%p2404_p4), %s561_s20, 128  }
  0x9c   : > { %2221 = vsyncadd (%p2404_p4), %s561_s20, 4294967168  ;;  %s569_s23 = sand.u32 1, %s2395_s19   ;;  %s573_s14 = scalar_lea.vmem [#allocation5], %s2560_s27 }
  0x9d   : > { %s570_s24 = scalar_lea.sflag [#allocation6], %s569_s23 }
  0x9e   : > { %2223 = dma.done.wait (%p2404_p4), %s570_s24, 256  }
  0x9f   : > { %2225 = vsyncadd (%p2404_p4), %s570_s24, 4294967040  ;;  %s582_s28 = scalar_lea.vmem [#allocation7], %s2560_s27  ;;  %s588_s16 = scalar_lea.sflag [#allocation9], %s569_s23 }
  0xa0   : > { %s591_s13 = scalar_lea.vmem [#allocation8], %s2560_s27 }
  0xa1   : > { %2227 = dma.done.wait (%p2404_p4), %s588_s16, 128  }
  0xa2   : > { %2229 = vsyncadd (%p2404_p4), %s588_s16, 4294967168  ;;  %p2805_p1 = scmp.eq.s32.totalorder %s2395_s19, 0 }
  0xa4   : > { %2231 = dma.done.wait (%p2805_p1), [#allocation9], 256   ;;  %p2806_p8 = pmov %p2805_p1 }
  0xa5   : > { %p2807_p11 = pmov %p2805_p1 }
  0xa6   : > { %2233 = vsyncadd (%p2806_p8), [#allocation9], 4294967040 }
  0xa7   : > { %2235 = dma.done.wait (%p2807_p11), [#allocation12], 512   ;;  %p2808_p0 = pmov %p2805_p1 }
  0xa9   : > { %2237 = vsyncadd (%p2808_p0), [#allocation12], 4294966784  ;;  %p2809_p10 = pmov %p2808_p0 }
  0xaa   : > { %p2810_p6 = pmov %p2808_p0 }
  0xab   : > { %2239 = dma.done.wait (%p2809_p10), [#allocation15], 16  }
  0xac   : > { %2241 = vsyncadd (%p2810_p6), [#allocation15], 4294967280  ;;  %v2280_v0 = vmov 0.0   ;;  %vm2281_vm0 = vmmov 0   ;;  %v1926_v1 = vld [vmem:[#allocation11 + $0x8] sm:$0xff]   ;;  %v1927_v2 = vld [vmem:[#allocation10 + $0x8] sm:$0xff]  }
  0xad   : > { %1726 = vmatprep.subr.bf16.mxu1 %v2280_v0  ;;  %1718 = vmatprep.subr.bf16.mxu0 %v2280_v0  ;;  %v1928_v3 = vld [vmem:[#allocation11] sm:$0xff]   ;;  %v1929_v4 = vld [vmem:[#allocation10] sm:$0xff]   ;;  %vm698_vm1 = vcmask 261120   ;;  %vm879_vm2 = vcmask 64512   ;;  %s2282_s12 = smov 112   ;;  %s2283_s22 = smov 120  }
  0xae   : > { %1730 = vmatprep.mubr.msk.bf16.mxu1 %vm2281_vm0, %v2280_v0  ;;  %1722 = vmatprep.mubr.msk.bf16.mxu0 %vm2281_vm0, %v2280_v0  ;;  %v671_v5 = vld [vmem:[%s582_s28] sm:$0xff]  ;;  %v672_v6 = vld [vmem:[%s591_s13] sm:$0xff]  ;;  %s2284_s26 = smov 104   ;;  %vm939_vm3 = vcmask 1043456   ;;  %s2285_s6 = smov 8   ;;  %vm1331_vm4 = vcmask 130048  }
  0xaf   : > { %1727 = vmatpush3.bf16.msra.mxu1 %v1926_v1  ;;  %1719 = vmatpush3.bf16.msra.mxu0 %v1927_v2  ;;  %v2602_v7 = vld [vmem:[%s564_s0] sm:$0xff]  ;;  %v673_v8 = vadd.f32 %v672_v6, %v671_v5  ;;  %v669_v9 = vld [vmem:[%s573_s14] sm:$0xff]  ;;  %v809_v30 = vpack.c.bf16 %v671_v5, %v671_v5  ;;  %s2286_s23 = smov 16   ;;  %s2287_s24 = smov 24   ;;  %vm1333_vm5 = vcmask 195584  }
  0xb0   : > { %1728 = vmatprep.subr.bf16.mxu1 %v2280_v0  ;;  %1720 = vmatprep.subr.bf16.mxu0 %v2280_v0  ;;  %v670_v10 = vadd.f32 %v669_v9, %v2602_v7  ;;  %v1664_v13 = vld [vmem:[%s2750_s7] ss:$0 sm:$0xff]  ;;  %v1930_v28 = vld [vmem:[#allocation13 + $0x8] sm:$0xff]   ;;  %v1668_v45 = vld [vmem:[#allocation14] ss:$0 sm:$0xff]  ;;  %s2811_s16 = sld [smem:[#allocation25_spill]] }
  0xb1   : > { %v742_v11 = vpack.c.bf16 %v673_v8, %v673_v8  ;;  %v1660_v14 = vld [vmem:[%s2748_s5] ss:$0 sm:$0xff]  ;;  %s2813_s25 = sld [smem:[#allocation35_spill]]  ;;  %s666_s1 = scalar_lea.vmem [#allocation16], %s2560_s27 }
  0xb2   : > { %v674_v12 = vpack.c.bf16 %v670_v10, %v670_v10  ;;  %v1931_v29 = vld [vmem:[#allocation13] sm:$0xff]   ;;  %s1449_s29 = sshll.u32 %s666_s1, 4  ;;  %s2815_s0 = sld [smem:[#allocation37_spill]]  ;;  %s1450_s29 = int_to_ptr.vmem [resolvable:$true] %s1449_s29 }
  0xb3   : > { %1729 = vmatpush3.bf16.msra.mxu1 %v1928_v3  ;;  %1721 = vmatpush3.bf16.msra.mxu0 %v1929_v4  ;;  %s2168_s14 = scalar_lea.vmem %s1450_s29, 128  ;;  %s2288_s28 = smov [#allocation16]  }
  0xb4   : > { %1742 = vmatprep.subr.bf16.mxu1 %v2280_v0  ;;  %1734 = vmatprep.subr.bf16.mxu0 %v2280_v0  ;;  %p2169_p4 = scmp.ne.s32.totalorder %s1450_s29, %s2168_s14  ;;  %s2172_s19 = sshll.u32 %s2288_s28, 4  ;;  %s2173_s19 = int_to_ptr.vmem [resolvable:$false] %s2172_s19 }
  0xb5   : > { %s2174_s27 = scalar_lea.vmem %s2173_s19, 256  ;;  %p2175_p3 = scmp.lt.s32.totalorder %s1450_s29, %s2173_s19 }
  0xb6   : > { %1731 = vmatmul.mubr.msk.bf16.vlgmr.msra.gmra.mxu1 %vm698_vm1, %v742_v11  ;;  %1723 = vmatmul.mubr.msk.bf16.vlgmr.msra.gmra.mxu0 %vm698_vm1, %v674_v12  ;;  %p2170_p5 = pnand %p2169_p4, %p2461_p7  ;;  %p2176_p9 = scmp.lt.s32.totalorder %s2174_s27, %s2168_s14 }
  0xb7   : > { %1744 = vmatprep.mubr.msk.bf16.mxu1 %vm2281_vm0, %v2280_v0  ;;  %1738 = vmatprep.mubr.msk.bf16.mxu0 %vm2281_vm0, %v2280_v0 }
  0xb8   : > { %1735 = vmatpush3.bf16.msra.mxu0 %v1930_v28  ;;  %p2171_p12 = pneg %p2170_p5  ;;  %p2177_p13 = por %p2176_p9, %p2175_p3 }
  0xb9   : > { %1736 = vmatprep.subr.bf16.mxu0 %v2280_v0 }
  0xba   : > { %p2178_p2 = pnand %p2177_p13, %p2171_p12 }
  0xbc   : > { %1737 = vmatpush3.bf16.msra.mxu0 %v1931_v29 }
  0xbd   : > { %1748 = vmatprep.subr.bf16.mxu0 %v2280_v0 }
  0xbf   : > { %1739 = vmatmul.mubr.msk.bf16.vlgmr.msra.gmra.mxu0 %vm698_vm1, %v809_v30 }
  0xc0   : > { %1750 = vmatprep.mubr.msk.bf16.mxu0 %vm2281_vm0, %v2280_v0 }
 0x176   : > { %v803_v15 = vpop.f32.mrf.mxu1  ;;  %v736_v17 = vpop.f32.mrf.mxu0 }
 0x177   : > { %v804_v16 = vadd.f32 %v1664_v13, %v803_v15  ;;  %v737_v18 = vadd.f32 %v1660_v14, %v736_v17 }
 0x178   : > { %v1732_v19 = vpop.f32.mrf.mxu1  ;;  %v1724_v21 = vpop.f32.mrf.mxu0 }
 0x179   : > { %v877_v20 = vpack.c.bf16 %v804_v16, %v804_v16  ;;  %v876_v23 = vpack.c.bf16 %v737_v18, %v737_v18 }
 0x17a   : > { %v806_v22 = vpop.f32.mrf.mxu1  ;;  %v739_v24 = vpop.f32.mrf.mxu0 }
 0x17b   : > { %1100 = vrot.lane.b32.xlu1 %v877_v20, %s2282_s12  ;;  %989 = vrot.lane.b32.xlu0 %v877_v20, %s2283_s22  ;;  %v884_v25 = vsel %vm879_vm2, %v877_v20, 0 }
 0x17c   : > { %v1733_v26 = vpop.f32.mrf.mxu1  ;;  %1743 = vmatpush3.bf16.xpose.msra.mxu1 %v884_v25  ;;  %v1725_v27 = vpop.f32.mrf.mxu0 }
 0x17d   : > { %1754 = vmatprep.subr.bf16.mxu1 %v2280_v0 }
 0x17f   : > { %1098 = vrot.lane.b32.xlu1 %v876_v23, %s2282_s12  ;;  %986 = vrot.lane.b32.xlu0 %v876_v23, %s2283_s22  ;;  %v870_v46 = vpop.f32.mrf.mxu0 }
 0x180   : > { %v871_v47 = vadd.f32 %v1668_v45, %v870_v46 }
 0x181   : > { %v1740_v48 = vpop.f32.mrf.mxu0 }
 0x182   : > { %v878_v49 = vpack.c.bf16 %v871_v47, %v871_v47 }
 0x183   : > { %1208 = vrot.lane.b32.xlu1 %v876_v23, %s2284_s26  ;;  %1210 = vrot.lane.b32.xlu0 %v877_v20, %s2284_s26  ;;  %v873_v50 = vpop.f32.mrf.mxu0 }
 0x184   : > { %1745 = vmatmul.mubr.msk.bf16.vlgmr.msra.gmra.mxu1 %vm879_vm2, %v876_v23  ;;  %v941_v51 = vsel %vm939_vm3, %v878_v49, 0 }
 0x185   : > { %1756 = vmatprep.mubr.msk.bf16.mxu1 %vm2281_vm0, %v2280_v0  ;;  %v1741_v52 = vpop.f32.mrf.mxu0  ;;  %1749 = vmatpush3.bf16.msra.mxu0 %v941_v51 }
 0x186   : > { %1760 = vmatprep.subr.bf16.mxu0 %v2280_v0 }
 0x1ed   : > { %v990_v31 = vpop.permute.xlu0 %989  ;;  %v1101_v33 = vpop.permute.xlu1 %1100 }
 0x1ee   : > { %v995_v32 = vsel %vm879_vm2, %v990_v31, 0  ;;  %v1106_v35 = vsel %vm879_vm2, %v1101_v33, 0 }
 0x1ef   : > { %1755 = vmatpush3.bf16.xpose.msra.mxu1 %v995_v32 }
 0x1f0   : > { %1766 = vmatprep.subr.bf16.mxu1 %v2280_v0 }
 0x1f1   : > { %v987_v34 = vpop.permute.xlu0 %986  ;;  %v1099_v37 = vpop.permute.xlu1 %1098 }
 0x1f5   : > { %v1211_v36 = vpop.permute.xlu0 %1210  ;;  %v1209_v39 = vpop.permute.xlu1 %1208 }
 0x1f6   : > { %1757 = vmatmul.mubr.msk.bf16.vlgmr.msra.gmra.mxu1 %vm879_vm2, %v987_v34  ;;  %v1216_v38 = vsel %vm879_vm2, %v1211_v36, 0 }
 0x1f7   : > { %1767 = vmatpush3.bf16.xpose.msra.mxu1 %v1106_v35  ;;  %1768 = vmatprep.mubr.msk.bf16.mxu1 %vm2281_vm0, %v2280_v0 }
 0x1f8   : > { %1778 = vmatprep.subr.bf16.mxu1 %v2280_v0 }
 0x1fe   : > { %1769 = vmatmul.mubr.msk.bf16.vlgmr.msra.gmra.mxu1 %vm879_vm2, %v1099_v37 }
 0x1ff   : > { %1779 = vmatpush3.bf16.xpose.msra.mxu1 %v1216_v38  ;;  %1780 = vmatprep.mubr.msk.bf16.mxu1 %vm2281_vm0, %v2280_v0 }
 0x200   : > { %1790 = vmatprep.subr.bf16.mxu1 %v2280_v0 }
 0x206   : > { %1781 = vmatmul.mubr.msk.bf16.vlgmr.msra.gmra.mxu1 %vm879_vm2, %v1209_v39 }
 0x207   : > { %1794 = vmatprep.mubr.msk.bf16.mxu1 %vm2281_vm0, %v2280_v0 }
 0x244   : > { %v920_v40 = vpop.f32.mrf.mxu1 }
 0x245   : > { %v926_v41 = vsel %vm879_vm2, %v920_v40, -inf }
 0x246   : > { %927 = vmax.xlane.f32.xlu0 %v926_v41  ;;  %v1746_v42 = vpop.f32.mrf.mxu1 }
 0x247   : > { %v1932_v42 = vld [vmem:[%s2753_s10 + $0x8] sm:$0xff]  }
 0x248   : > { %v923_v43 = vpop.f32.mrf.mxu1  ;;  %1791 = vmatpush3.bf16.msra.mxu1 %v1932_v42 }
 0x249   : > { %1792 = vmatprep.subr.bf16.mxu1 %v2280_v0 }
 0x24a   : > { %v1747_v44 = vpop.f32.mrf.mxu1 }
 0x2b6   : > { %v1031_v53 = vpop.f32.mrf.mxu1 }
 0x2b7   : > { %v1037_v54 = vsel %vm879_vm2, %v1031_v53, -inf }
 0x2b8   : > { %1038 = vmax.xlane.f32.xlu1 %v1037_v54  ;;  %v1758_v55 = vpop.f32.mrf.mxu1 }
 0x2ba   : > { %v1034_v56 = vpop.f32.mrf.mxu1 }
 0x2bc   : > { %v1759_v57 = vpop.f32.mrf.mxu1 }
 0x2be   : > { %v1142_v58 = vpop.f32.mrf.mxu1 }
 0x2bf   : > { %v1148_v59 = vsel %vm879_vm2, %v1142_v58, -inf }
 0x2c0   : > { %1149 = vmax.xlane.f32.xlu0 %v1148_v59  ;;  %v1770_v60 = vpop.f32.mrf.mxu1 }
 0x2c2   : > { %v1145_v61 = vpop.f32.mrf.mxu1 }
 0x2c4   : > { %v1771_v62 = vpop.f32.mrf.mxu1 }
 0x2c6   : > { %v1252_v63 = vpop.f32.mrf.mxu1 }
 0x2c7   : > { %v1258_v1 = vsel %vm879_vm2, %v1252_v63, -inf }
 0x2c8   : > { %1259 = vmax.xlane.f32.xlu0 %v1258_v1  ;;  %v1782_v2 = vpop.f32.mrf.mxu1 }
 0x2c9   : > { %1048 = vrot.lane.b32.xlu1 %v878_v49, %s2283_s22  ;;  %s2814_s22 = sld [smem:[#allocation36_spill]] }
 0x2ca   : > { %v1255_v3 = vpop.f32.mrf.mxu1 }
 0x2cc   : > { %v1783_v4 = vpop.f32.mrf.mxu1 }
 0x2cd   : > { %1268 = vrot.lane.b32.xlu1 %v878_v49, %s2284_s26  ;;  %s1687_s26 = sshll.u32 %s2811_s16, 7 }
 0x2cf   : > { %v928_v5 = vpop.xlane.xlu0 %927 }
 0x2d0   : > { %v929_v6 = vsub.f32 %v920_v40, %v928_v5 }
 0x2d2   : > { %v930_v8 = vmul.f32 1.442695, %v929_v6 }
 0x2d4   : > { %1934 = vpow2.f32 %v930_v8 }
 0x2de   : > { %1158 = vrot.lane.b32.xlu0 %v878_v49, %s2282_s12  ;;  %v1933_v49 = vld [vmem:[%s2753_s10] sm:$0xff]  }
 0x2df   : > { %1793 = vmatpush3.bf16.msra.mxu1 %v1933_v49 }
 0x2e1   : > { %v1935_v9 = vpop.eup %1934 }
 0x2e2   : > { %v935_v10 = vpack.c.bf16 %v1935_v9, %v1935_v9  ;;  %v932_v27 = vsel %vm879_vm2, %v1935_v9, 0.0 }
 0x2e4   : > { %1751 = vmatmul.mubr.msk.bf16.vlgmr.msra.gmra.mxu0 %vm879_vm2, %v935_v10  ;;  %v1680_v10 = vld [vmem:[%s2754_s11] ss:$0 sm:$0xff] }
 0x2e5   : > { %1762 = vmatprep.mubr.msk.bf16.mxu0 %vm2281_vm0, %v2280_v0 }
 0x341   : > { %v1039_v11 = vpop.xlane.xlu1 %1038 }
 0x342   : > { %v1040_v12 = vsub.f32 %v1031_v53, %v1039_v11 }
 0x344   : > { %v1041_v13 = vmul.f32 1.442695, %v1040_v12 }
 0x345   : > { %v1049_v14 = vpop.permute.xlu1 %1048 }
 0x346   : > { %1936 = vpow2.f32 %v1041_v13  ;;  %v1054_v15 = vsel %vm939_vm3, %v1049_v14, 0 }
 0x347   : > { %1761 = vmatpush3.bf16.msra.mxu0 %v1054_v15 }
 0x348   : > { %1772 = vmatprep.subr.bf16.mxu0 %v2280_v0 }
 0x349   : > { %v1150_v16 = vpop.xlane.xlu0 %1149  ;;  %v1269_v29 = vpop.permute.xlu1 %1268 }
 0x34a   : > { %v1151_v17 = vsub.f32 %v1142_v58, %v1150_v16  ;;  %v1274_v32 = vsel %vm939_vm3, %v1269_v29, 0 }
 0x34c   : > { %v1152_v18 = vmul.f32 1.442695, %v1151_v17 }
 0x34e   : > { %1938 = vpow2.f32 %v1152_v18 }
 0x351   : > { %v1260_v19 = vpop.xlane.xlu0 %1259 }
 0x352   : > { %v1261_v20 = vsub.f32 %v1252_v63, %v1260_v19 }
 0x353   : > { %v1937_v21 = vpop.eup %1936 }
 0x354   : > { %v1262_v22 = vmul.f32 1.442695, %v1261_v20  ;;  %v1043_v23 = vsel %vm879_vm2, %v1937_v21, 0.0  ;;  %v1046_v24 = vpack.c.bf16 %v1937_v21, %v1937_v21 }
 0x355   : > { %v1159_v25 = vpop.permute.xlu0 %1158  ;;  %1044 = vadd.xlane.f32.xlu1 %v1043_v23 }
 0x356   : > { %1940 = vpow2.f32 %v1262_v22  ;;  %v1164_v26 = vsel %vm939_vm3, %v1159_v25, 0  ;;  %1763 = vmatmul.mubr.msk.bf16.vlgmr.msra.gmra.mxu0 %vm879_vm2, %v1046_v24 }
 0x357   : > { %1773 = vmatpush3.bf16.msra.mxu0 %v1164_v26  ;;  %1774 = vmatprep.mubr.msk.bf16.mxu0 %vm2281_vm0, %v2280_v0  ;;  %v1684_v26 = vld [vmem:[%s2813_s25] ss:$0 sm:$0xff] }
 0x358   : > { %1784 = vmatprep.subr.bf16.mxu0 %v2280_v0 }
 0x359   : > { %933 = vadd.xlane.f32.xlu1 %v932_v27 }
 0x35b   : > { %v1939_v28 = vpop.eup %1938 }
 0x35c   : > { %v1154_v30 = vsel %vm879_vm2, %v1939_v28, 0.0  ;;  %v1157_v31 = vpack.c.bf16 %v1939_v28, %v1939_v28  ;;  %v1685_v28 = vld [vmem:[%s2814_s22] ss:$0 sm:$0xff] }
 0x35d   : > { %1155 = vadd.xlane.f32.xlu0 %v1154_v30 }
 0x35e   : > { %1775 = vmatmul.mubr.msk.bf16.vlgmr.msra.gmra.mxu0 %vm879_vm2, %v1157_v31 }
 0x35f   : > { %1785 = vmatpush3.bf16.msra.mxu0 %v1274_v32  ;;  %1786 = vmatprep.mubr.msk.bf16.mxu0 %vm2281_vm0, %v2280_v0 }
 0x363   : > { %v1941_v33 = vpop.eup %1940 }
 0x364   : > { %v1264_v34 = vsel %vm879_vm2, %v1941_v33, 0.0  ;;  %v1267_v35 = vpack.c.bf16 %v1941_v33, %v1941_v33 }
 0x365   : > { %1265 = vadd.xlane.f32.xlu0 %v1264_v34 }
 0x366   : > { %1787 = vmatmul.mubr.msk.bf16.vlgmr.msra.gmra.mxu0 %vm879_vm2, %v1267_v35 }
 0x3a4   : > { %v977_v36 = vpop.f32.mrf.mxu0 }
 0x3a6   : > { %v1752_v37 = vpop.f32.mrf.mxu0 }
 0x3a8   : > { %v980_v38 = vpop.f32.mrf.mxu0 }
 0x3aa   : > { %v1753_v39 = vpop.f32.mrf.mxu0 }
 0x3de   : > { %v1045_v40 = vpop.xlane.xlu1 %1044 }
 0x3df   : > { %1942 = vrcp.f32 %v1045_v40 }
 0x3e2   : > { %v934_v62 = vpop.xlane.xlu1 %933 }
 0x3e6   : > { %v1156_v41 = vpop.xlane.xlu0 %1155 }
 0x3e7   : > { %1944 = vrcp.f32 %v1156_v41 }
 0x3ec   : > { %v1943_v43 = vpop.eup %1942 }
 0x3ee   : > { %v1266_v44 = vpop.xlane.xlu0 %1265 }
 0x3ef   : > { %1946 = vrcp.f32 %v1266_v44 }
 0x3f0   : > { %1948 = vrcp.f32 %v934_v62 }
 0x3f4   : > { %v1945_v51 = vpop.eup %1944 }
 0x3fc   : > { %v1947_v0 = vpop.eup %1946 }
 0x3fd   : > { %v1949_v63 = vpop.eup %1948 }
 0x3fe   : > { %v984_v3 = vmul.f32 %v1949_v63, %v977_v36 }
 0x416   : > { %v1090_v45 = vpop.f32.mrf.mxu0 }
 0x417   : > { %v1097_v46 = vmul.f32 %v1943_v43, %v1090_v45 }
 0x418   : > { %v1764_v47 = vpop.f32.mrf.mxu0 }
 0x419   : > { %1319 = vrot.lane.b32.xlu0 %v1097_v46, %s2285_s6 }
 0x41a   : > { %v1093_v48 = vpop.f32.mrf.mxu0 }
 0x41c   : > { %v1765_v50 = vpop.f32.mrf.mxu0 }
 0x41e   : > { %v1200_v52 = vpop.f32.mrf.mxu0 }
 0x41f   : > { %v1207_v53 = vmul.f32 %v1945_v51, %v1200_v52 }
 0x420   : > { %v1776_v54 = vpop.f32.mrf.mxu0 }
 0x421   : > { %1323 = vrot.lane.b32.xlu1 %v1207_v53, %s2286_s23  ;;  %s1447_s23 = scalar_lea.hbm %s2815_s0, %s1687_s26 }
 0x422   : > { %v1203_v55 = vpop.f32.mrf.mxu0 }
 0x424   : > { %v1777_v56 = vpop.f32.mrf.mxu0 }
 0x426   : > { %v1310_v57 = vpop.f32.mrf.mxu0 }
 0x427   : > { %v1317_v58 = vmul.f32 %v1947_v0, %v1310_v57 }
 0x428   : > { %v1788_v59 = vpop.f32.mrf.mxu0 }
 0x429   : > { %1327 = vrot.lane.b32.xlu1 %v1317_v58, %s2287_s24  ;;  %s1435_s24 = scalar_lea.sflag [#allocation4], %s2557_s17 }
 0x42a   : > { %v1313_v60 = vpop.f32.mrf.mxu0 }
 0x42c   : > { %v1789_v61 = vpop.f32.mrf.mxu0 }
 0x48b   : > { %v1320_v1 = vpop.permute.xlu0 %1319 }
 0x48c   : > { %v1330_v4 = vsel %vm879_vm2, %v984_v3, %v1320_v1 }
 0x493   : > { %v1324_v2 = vpop.permute.xlu1 %1323 }
 0x494   : > { %v1332_v5 = vsel %vm1331_vm4, %v1330_v4, %v1324_v2 }
 0x49b   : > { %v1328_v6 = vpop.permute.xlu1 %1327 }
 0x49c   : > { %v1334_v8 = vsel %vm1333_vm5, %v1332_v5, %v1328_v6 }
 0x49d   : > { %v1335_v9 = vpack.c.bf16 %v1334_v8, %v1334_v8 }
 0x49f   : > { %1795 = vmatmul.mubr.msk.bf16.vlgmr.msra.gmra.mxu1 %vm698_vm1, %v1335_v9 }
 0x55f   : > { %v1396_v11 = vpop.f32.mrf.mxu1 }
 0x560   : > { %v1397_v12 = vadd.f32 %v1680_v10, %v1396_v11 }
 0x561   : > { %v1796_v13 = vpop.f32.mrf.mxu1 }
 0x562   : > { %v1402_v14 = vadd.f32 %v1397_v12, %v2602_v7 }
 0x563   : > { %v1399_v15 = vpop.f32.mrf.mxu1 }
 0x564   : > { %v1403_v16 = vsel %vm698_vm1, %v1402_v14, 0.0 }
 0x565   : > { %1404 = vadd.xlane.f32.xlu0 %v1403_v16  ;;  %v1797_v17 = vpop.f32.mrf.mxu1 }
 0x5ee   : > { %v1405_v18 = vpop.xlane.xlu0 %1404 }
 0x5ef   : > { %v1407_v19 = vmul.f32 0.03125, %v1405_v18 }
 0x5f1   : > { %v1408_v20 = vsub.f32 %v1402_v14, %v1407_v19 }
 0x5f3   : > { %v1409_v21 = vmul.f32 %v1408_v20, %v1408_v20 }
 0x5f5   : > { %v1410_v22 = vsel %vm698_vm1, %v1409_v21, 0.0 }
 0x5f6   : > { %1411 = vadd.xlane.f32.xlu1 %v1410_v22 }
 0x67f   : > { %v1412_v23 = vpop.xlane.xlu1 %1411 }
 0x680   : > { %v1413_v24 = vmul.f32 0.03125, %v1412_v23 }
 0x682   : > { %v1414_v25 = vadd.f32 1e-05, %v1413_v24 }
 0x684   : > { %1950 = vrsqrt.f32 %v1414_v25 }
 0x691   : > { %v1951_v7 = vpop.eup %1950 }
 0x692   : > { %v1416_v27 = vmul.f32 %v1951_v7, %v1408_v20 }
 0x694   : > { %v1424_v29 = vmul.f32 %v1684_v26, %v1416_v27 }
 0x696   : > { %v1432_v30 = vadd.f32 %v1685_v28, %v1424_v29 }
 0x698   : > { %1433 = vst.msk [vmem:[%s666_s1] sm:$0xff] %vm698_vm1, %v1432_v30 }
 0x699   : > { %2181 = shalt.err (!%p2178_p2)
}
 0x69a   : > { %s2182_s16 = scalar_lea.hbm %s1447_s23, 128  ;;  %s2186_s25 = scalar_lea.hbm %s2815_s0, 256 }
 0x69b   : > { %p2183_p1 = scmp.ne.s32.totalorder %s1447_s23, %s2182_s16  ;;  %p2187_p0 = scmp.lt.s32.totalorder %s1447_s23, %s2815_s0 }
 0x69c   : > { %p2188_p10 = scmp.lt.s32.totalorder %s2186_s25, %s2182_s16 }
 0x69d   : > { %p2184_p8 = pnand %p2183_p1, %p2461_p7 }
 0x69e   : > { %p2189_p6 = por %p2188_p10, %p2187_p0 }
 0x69f   : > { %p2185_p11 = pneg %p2184_p8 }
 0x6a1   : > { %p2190_p4 = pnand %p2189_p6, %p2185_p11 }
 0x6a3   : > { %2193 = shalt.err (!%p2190_p4)
}
 0x6a4   : > { %1822 = dma.vmem_to_hbm [thread:$0]  (%p2461_p7), %s1450_s29, 128, %s1447_s23, %s1435_s24  }
 0x6a5 PF: > { %s2816_s22 = sld [smem:[#allocation24_spill]]  ;;  %p2819_p12 = scmp.ge.s32.totalorder %s2268_s18, 2 }
 0x6a6   : > { %s2817_s26 = sld [smem:[#allocation27_spill]] }
 0x6ab   : > { %s1461_s1 = sand.u32 1, %s2816_s22  }
 0x6ac   : > { %p2818_p5 = scmp.ne.s32.totalorder %s2817_s26, 0  ;;  %s1462_s6 = scalar_lea.sflag [#allocation4], %s1461_s1 }
 0x6ae   : > { %p1851_p3 = pnand %p2819_p12, %p2818_p5 }
 0x6b0   : > { %p1852_p9 = pneg %p1851_p3 }
 0x6b2   : > { %2243 = dma.done.wait (%p1852_p9), %s1462_s6, 128  }
 0x6b3   : > { %2245 = vsyncadd (%p1852_p9), %s1462_s6, 4294967168  ;;  %s38_s18 = sadd.s32 1, %s2268_s18   ;;  %s2820_s20 = sld [smem:[#allocation30_spill]] }
 0x6b4   : > { %p35_p13 = scmp.ge.s32.totalorder %s38_s18, 4   ;;  %s2821_s16 = sld [smem:[#allocation26_spill]] }
 0x6b5   : > { %s2822_s17 = sld [smem:[#allocation28_spill]]  ;;  %s2823_s29 = smov %s2252_s30 }
 0x6b6   : > { %s2824_s30 = smov %s2256_s15  ;;  %37 = sbr.rel (!%p35_p13) target bundleno = 20 (0x14), region = 174 }
 0x6b9   : > { %s2825_s15 = smov %s2820_s20 }
 0x6bb   :  { %1467 = vsyncpa [#allocation3], 1 }
 0x6bc   :  { %1469 = vsyncpa [#allocation3 + $0x1], 1 }
 0x6bd   :  { %1470 = vsyncpa [#allocation6], 1 }
 0x6be   :  { %1472 = vsyncpa [#allocation6 + $0x1], 1 }
 0x6bf   :  { %1473 = vsyncpa [#allocation9], 1 }
 0x6c0   :  { %1475 = vsyncpa [#allocation9 + $0x1], 1 }
 0x6c1   :  { %1476 = vsyncpa [#allocation12], 1 }
 0x6c2   :  { %1477 = vsyncpa [#allocation15], 1 }
 0x6c3   :  { %1478 = vsyncpa [#allocation4], 1 }
 0x6c4   :  { %1480 = vsyncpa [#allocation4 + $0x1], 1 }

</bundles_post_ra>
